<compile_context>
chip_gen: v7x
topology: tpu7x:2x2x1
jax: 0.10.0
libtpu: 0.0.40
codegen_flags: <defaults>
</compile_context>

<pallas_src>
import jax
import jax.numpy as jnp
from jax import lax
from jax.experimental import pallas as pl
from jax.experimental.pallas import tpu as pltpu


def _conv_gemm_kernel(w_ref, p_ref, b_ref, o_ref):
    # w_ref: (Cout, K) bf16   p_ref: (K, TILE_M) bf16
    # b_ref: (Cout, 1) f32    o_ref: (Cout, TILE_M) f32
    acc = jnp.dot(w_ref[...], p_ref[...], preferred_element_type=jnp.float32)
    o_ref[...] = (acc + b_ref[...]).astype(o_ref.dtype)


def conv2d_pallas(x_nchw, weight, bias, *, padding=9, tile_m=1024):
    # TODO(synk): stride fixed to 1 (matches UpSample1); other strides not implemented.
    N, Cin, H, W = x_nchw.shape
    Cout, _, KH, KW = weight.shape
    Ho = H + 2 * padding - KH + 1
    Wo = W + 2 * padding - KW + 1

    # Interior output window: only pixels whose 3x3 receptive field touches the real
    # image.  pad_in is the amount of zero-padding actually needed for that window.
    pad_in = min(padding, KH - 1)
    off = padding - pad_in                      # border width of pure-bias output pixels
    Hi = H + 2 * pad_in - KH + 1
    Wi = W + 2 * pad_in - KW + 1

    # --- glue: pad + im2col in transposed (K, M) layout (data movement only) ---
    xp = jnp.pad(x_nchw, ((0, 0), (0, 0), (pad_in, pad_in), (pad_in, pad_in)))
    xp = xp.astype(jnp.bfloat16)                # halve im2col / DMA bytes
    cols = [xp[:, :, ky:ky + Hi, kx:kx + Wi] for ky in range(KH) for kx in range(KW)]
    patches = jnp.stack(cols, axis=0)           # (KH*KW, N, Cin, Hi, Wi)
    patches = jnp.transpose(patches, (0, 2, 1, 3, 4))   # (KH*KW, Cin, N, Hi, Wi)
    K = KH * KW * Cin
    M = N * Hi * Wi
    patches = patches.reshape(K, M)             # K ordered (ky, kx, cin); M ordered (n,h,w)

    # weight (Cout, Cin, KH, KW) -> (Cout, KH, KW, Cin) -> (Cout, K)  (same K ordering)
    w_t = jnp.transpose(weight, (0, 2, 3, 1)).reshape(Cout, K).astype(jnp.bfloat16)
    b_col = bias.reshape(Cout, 1).astype(jnp.float32)

    # Tile the M axis: big lane-dense tiles, multiple of 128, grid length >= 2 (v7x).
    tile_cap = max(128, ((pl.cdiv(M, 2) + 127) // 128) * 128)
    tile_m = min(tile_m, tile_cap)
    grid_m = max(2, pl.cdiv(M, tile_m))
    M_pad = grid_m * tile_m
    if M_pad != M:
        patches = jnp.pad(patches, ((0, 0), (0, M_pad - M)))

    cost = pl.CostEstimate(
        flops=2 * M_pad * K * Cout,
        transcendentals=0,
        bytes_accessed=(K * M_pad * 2) + (Cout * K * 2) + (Cout * 4) + (Cout * M_pad * 4),
    )

    out_t = pl.pallas_call(
        _conv_gemm_kernel,
        out_shape=jax.ShapeDtypeStruct((Cout, M_pad), jnp.float32),
        grid_spec=pltpu.PrefetchScalarGridSpec(
            num_scalar_prefetch=0,
            grid=(grid_m,),
            in_specs=[
                pl.BlockSpec((Cout, K), lambda i: (0, 0)),      # weight resident
                pl.BlockSpec((K, tile_m), lambda i: (0, i)),    # patch cols, tiled over M
                pl.BlockSpec((Cout, 1), lambda i: (0, 0)),      # bias
            ],
            out_specs=pl.BlockSpec((Cout, tile_m), lambda i: (0, i)),  # lane-dense stores
        ),
        compiler_params=pltpu.CompilerParams(
            dimension_semantics=("parallel",),
            vmem_limit_bytes=32 * 1024 * 1024,
        ),
        cost_estimate=cost,
    )(w_t, patches, b_col)

    # (Cout, M) -> (N, Cout, Hi, Wi)
    out_int = out_t[:, :M].reshape(Cout, N, Hi, Wi)
    out_int = jnp.transpose(out_int, (1, 0, 2, 3))

    if off > 0:
        # Border output pixels see only zero padding -> value is exactly the bias.
        full = jnp.broadcast_to(
            bias.reshape(1, Cout, 1, 1).astype(jnp.float32), (N, Cout, Ho, Wo))
        return lax.dynamic_update_slice(full, out_int, (0, 0, off, off))
    return out_int


if __name__ == "__main__":
    key = jax.random.PRNGKey(0)
    k_x, k_w, k_b = jax.random.split(key, 3)

    # small shapes consistent with the module: NCHW input, Conv2d(4 -> 8, k=3, s=1, p=9)
    N, Cin, H, W = 2, 4, 16, 16
    Cout = 8

    x = jax.random.normal(k_x, (N, Cin, H, W), dtype=jnp.float32)
    weight = jax.random.normal(k_w, (Cout, Cin, 3, 3), dtype=jnp.float32) * 0.1
    bias = jax.random.normal(k_b, (Cout,), dtype=jnp.float32) * 0.1

    out = conv2d_pallas(x, weight, bias, padding=9)
    out = jax.block_until_ready(out)

    # reference check against XLA conv (same NCHW / OIHW conventions as PyTorch)
    ref = lax.conv_general_dilated(
        x, weight, window_strides=(1, 1), padding=[(9, 9), (9, 9)],
        dimension_numbers=("NCHW", "OIHW", "NCHW"),
        precision=lax.Precision.HIGHEST,
    ) + bias.reshape(1, Cout, 1, 1)

    assert out.shape == (N, Cout, H + 16, W + 16), out.shape
    max_err = float(jnp.max(jnp.abs(out - ref)))
    assert max_err < 1e-2, f"max abs err too large: {max_err}"
    print("KERNEL_OK")
</pallas_src>

<mosaic_0001>
module attributes {stable_mosaic.version = 11 : i64} {
  func.func @_conv_gemm_kernel(%arg0: i32, %arg1: memref<8x36xbf16, #tpu.memory_space<vmem>>, %arg2: memref<36x384xbf16, #tpu.memory_space<vmem>>, %arg3: memref<8x1xf32, #tpu.memory_space<vmem>>, %arg4: memref<8x384xf32, #tpu.memory_space<vmem>>) attributes {dimension_semantics = [#tpu.dimension_semantics<parallel>], iteration_bounds = array<i64: 2>, scalar_prefetch = 0 : i64, scratch_operands = 0 : i64, tpu.core_type = #tpu.core_type<tc>, window_params = [{pipeline_mode = #tpu.pipeline_mode<synchronous>, transform_indices = @transform_0, window_bounds = array<i64: 8, 36>}, {transform_indices = @transform_1, window_bounds = array<i64: 36, 384>}, {pipeline_mode = #tpu.pipeline_mode<synchronous>, transform_indices = @transform_2, window_bounds = array<i64: 8, 1>}, {transform_indices = @transform_3, window_bounds = array<i64: 8, 384>}]} {
    %c0 = arith.constant 0 : index
    %c0_0 = arith.constant 0 : index
    %0 = vector.load %arg1[%c0, %c0_0] : memref<8x36xbf16, #tpu.memory_space<vmem>>, vector<8x36xbf16>
    %c0_1 = arith.constant 0 : index
    %c0_2 = arith.constant 0 : index
    %1 = vector.load %arg2[%c0_1, %c0_2] : memref<36x384xbf16, #tpu.memory_space<vmem>>, vector<36x384xbf16>
    %cst = arith.constant dense<0.000000e+00> : vector<8x384xf32>
    %2 = tpu.matmul %0, %1, %cst {dimension_numbers = #tpu.dot_dimension_numbers<[1], [0], [0], [1], [0, 0, 1, 1], [], []>} : vector<8x36xbf16>, vector<36x384xbf16>, vector<8x384xf32> -> vector<8x384xf32>
    %c0_3 = arith.constant 0 : index
    %c0_4 = arith.constant 0 : index
    %3 = vector.load %arg3[%c0_3, %c0_4] : memref<8x1xf32, #tpu.memory_space<vmem>>, vector<8x1xf32>
    %4 = vector.broadcast %3 : vector<8x1xf32> to vector<8x384xf32>
    %5 = arith.addf %2, %4 : vector<8x384xf32>
    %c0_5 = arith.constant 0 : index
    %c0_6 = arith.constant 0 : index
    %6 = vector.load %arg4[%c0_5, %c0_6] : memref<8x384xf32, #tpu.memory_space<vmem>>, vector<8x384xf32>
    tpu.vector_store %arg4[%c0_5, %c0_6], %5 {strides = array<i32>} : memref<8x384xf32, #tpu.memory_space<vmem>>, vector<8x384xf32>,
    return
  }
  func.func @transform_0(%arg0: i32) -> (i32, i32) {
    %c0_i32 = arith.constant 0 : i32
    %c0_i32_0 = arith.constant 0 : i32
    %c0_i32_1 = arith.constant 0 : i32
    return %c0_i32, %c0_i32_0 : i32, i32
  }
  func.func @transform_1(%arg0: i32) -> (i32, i32) {
    %c0_i32 = arith.constant 0 : i32
    %c0_i32_0 = arith.constant 0 : i32
    return %c0_i32, %arg0 : i32, i32
  }
  func.func @transform_2(%arg0: i32) -> (i32, i32) {
    %c0_i32 = arith.constant 0 : i32
    %c0_i32_0 = arith.constant 0 : i32
    %c0_i32_1 = arith.constant 0 : i32
    return %c0_i32, %c0_i32_0 : i32, i32
  }
  func.func @transform_3(%arg0: i32) -> (i32, i32) {
    %c0_i32 = arith.constant 0 : i32
    %c0_i32_0 = arith.constant 0 : i32
    return %c0_i32, %arg0 : i32, i32
  }
}

</mosaic_0001>

<bundles_post_ra>
// kernel: tpu_custom_call.1
= control target key start
LH: loop header
LB: loop body
LE: loop exit
PB: predicated region body
PF: predicated region fallthrough
CT: control target
= control target key end

     0   :  { %8 = vsyncpa [#allocation3], 0  ;;  %s827_s0 = inlined_call_operand.vmem [shape: bf16[8,36], index: 0, kind: input, shape index: {}]   ;;  %s828_s1 = inlined_call_operand.hbm [shape: bf16[36,768], index: 1, kind: input, shape index: {}]   ;;  %s829_s2 = inlined_call_operand.vmem [shape: f32[8,1], index: 2, kind: input, shape index: {}]   ;;  %s830_s3 = inlined_call_operand.hbm [shape: f32[8,768], index: 3, kind: output, shape index: {}]  }
   0x1   :  { %10 = vsyncpa [#allocation3 + $0x1], 0 }
   0x2   :  { %11 = vsyncpa [#allocation4], 0 }
   0x3   :  { %13 = vsyncpa [#allocation4 + $0x1], 0  ;;  %s661_s12 = smov 0   ;;  %s663_s13 = smov 0  }
   0x4   :  { %s665_s14 = smov 0   ;;  %s667_s15 = smov 0  }
   0x5 LB: > { %s682_s16 = sadd.s32 4294967295, %s631_s15   ;;  %s432_s17 = sadd.s32 4294967294, %s631_s15   ;;  %s631_s15 = sphi %s667_s15, %s843_s15   ;;  %s627_s14 = sphi %s665_s14, %s842_s14   ;;  %s623_s13 = sphi %s663_s13, %s841_s13   ;;  %s619_s12 = sphi %s661_s12, %s840_s12  }
   0x6   : > { %s686_s18 = sadd.s32 1, %s631_s15   ;;  %s47_s19 = sadd.s32 1, %s627_s14 }
   0x7   : > { %s44_s20 = ssub.s32 %s631_s15, %s686_s18  ;;  %p54_p0 = scmp.ne.s32.totalorder %s627_s14, %s623_s13 }
   0x8   : > { %p45_p1 = scmp.eq.s32.totalorder %s44_s20, 0  ;;  %p55_p2 = scmp.eq.s32.totalorder %s631_s15, 0 }
   0x9   : > { %p60_p3 = scmp.ne.s32.totalorder %s623_s13, %s619_s12  ;;  %p61_p4 = scmp.eq.s32.totalorder %s682_s16, 0 }
   0xa   : > { %s698_s21 = scalar_select %p45_p1, %s627_s14, %s47_s19  }
   0xb   : > { %p56_p5 = por %p55_p2, %p54_p0  ;;  %p700_p6 = por %p61_p4, %p60_p3 }
   0xc   : > { %p105_p7 = scmp.eq.s32.totalorder %s682_s16, 1  ;;  %p111_p8 = scmp.eq.s32.totalorder %s432_s17, 1 }
   0xd   : > { %p483_p10 = scmp.lt.s32.totalorder %s631_s15, 2  ;;  %s137_s25 = sand.u32 1, %s627_s14  }
   0xe   : > { %p707_p11 = por %p105_p7, %p54_p0  ;;  %p711_p12 = por %p111_p8, %p60_p3 }
   0xf   : > { %s452_s26 = smul.u32 192, %s631_s15  ;;  %p722_p13 = pnand %p483_p10, %p56_p5 }
  0x10   : > { %s833_s23 = scalar_select %p707_p11, 1, 0 }
  0x11   : > { %s834_s24 = scalar_select %p711_p12, 1, 0 }
  0x12   : > { %s468_s27 = smul.u32 60, %s137_s25  ;;  %s720_s30 = scalar_lea.hbm %s828_s1, %s452_s26 }
  0x13   : > { %s729_s7 = scalar_lea.sflag [#allocation3], %s137_s25  ;;  %s535_s8 = scalar_lea.hbm %s720_s30, 960 }
  0x14   : > { %s141_s5 = scalar_lea.vmem [#allocation2], %s468_s27  ;;  %p536_p1 = scmp.ne.s32.totalorder %s720_s30, %s535_s8 }
  0x15   : > { %s148_s6 = sshll.u32 %s141_s5, 4  ;;  %p537_p2 = pneg %p722_p13  ;;  %s726_s6 = int_to_ptr.vmem [resolvable:$true] %s148_s6 }
  0x16   : > { %s540_s11 = scalar_lea.hbm %s828_s1, 1920  ;;  %p541_p5 = scmp.lt.u32.totalorder %s720_s30, %s828_s1 }
  0x17   : > { %p538_p3 = pnand %p537_p2, %p536_p1  ;;  %p542_p7 = scmp.lt.u32.totalorder %s540_s11, %s535_s8 }
  0x18   : > { %p544_p10 = scmp.lt.u32.totalorder %s535_s8, %s720_s30 }
  0x19   : > { %p539_p4 = pneg %p538_p3  ;;  %p543_p8 = por %p542_p7, %p541_p5 }
  0x1b   : > { %p545_p9 = por %p544_p10, %p543_p8 }
  0x1d   : > { %p546_p0 = pnand %p545_p9, %p539_p4 }
  0x1f   : > { %549 = shalt.err (!%p546_p0)
}
  0x20   : > { %s550_s20 = scalar_lea.vmem %s726_s6, 960  ;;  %s633_s25 = smov [#allocation2]  }
  0x21   : > { %p551_p1 = scmp.ne.s32.totalorder %s726_s6, %s550_s20  ;;  %s555_s26 = sshll.u32 %s633_s25, 4  ;;  %s556_s26 = int_to_ptr.vmem [resolvable:$false] %s555_s26 }
  0x22   : > { %s557_s27 = scalar_lea.vmem %s556_s26, 1920  ;;  %p558_p11 = scmp.lt.s32.totalorder %s726_s6, %s556_s26 }
  0x23   : > { %p553_p3 = pnand %p551_p1, %p537_p2  ;;  %p559_p5 = scmp.lt.s32.totalorder %s557_s27, %s550_s20 }
  0x25   : > { %p554_p12 = pneg %p553_p3  ;;  %p560_p7 = por %p559_p5, %p558_p11 }
  0x27   : > { %p561_p8 = pnand %p560_p7, %p554_p12 }
  0x29   : > { %564 = shalt.err (!%p561_p8)
}
  0x2a   : > { %s634_s28 = smov 384   ;;  %s635_s29 = smov 192  }
  0x2b   : > { %s636_s5 = smov 12   ;;  %p156_p9 = scmp.lt.s32.totalorder %s631_s15, 3 }
  0x2c   : > { %478 = dma.hbm_to_vmem [thread:$0]  (!%p722_p13), %s720_s30, 960, %s726_s6, %s729_s7, %s634_s28, %s635_s29, %s636_s5  }
  0x2d   : > { %p836_p0 = scmp.ge.s32.totalorder %s631_s15, 1 }
  0x2f   : > { %p157_p2 = pnand %p836_p0, %p156_p9 }
  0x30   : > { %s761_s8 = sand.u32 (!%p157_p2), 1, %s623_s13  }
  0x31   : > { %160 = sbr.rel (%p157_p2) target bundleno = 301 (0x12d), region = 32  ;;  %s163_s10 = scalar_lea.sflag (!%p157_p2), [#allocation3], %s761_s8 }
  0x32   : > { %s469_s9 = smul.u32 (!%p157_p2), 60, %s761_s8 }
  0x34   : > { %s166_s11 = scalar_lea.vmem (!%p157_p2), [#allocation2], %s469_s9 }
  0x38   : > { %610 = dma.done.wait (%p700_p6), %s163_s10, 960  }
  0x39   : > { %612 = vsyncadd (%p700_p6), %s163_s10, 4294966336  ;;  %v637_v0 = vmov 0.0   ;;  %vm638_vm0 = vmmov 0   ;;  %v639_v1 = vmov 0   ;;  %v524_v2 = vld [vmem:[%s166_s11 + $0x4] ss:$12 sps:$4 sm:$0xff]  }
  0x3a   : > { %458 = vmatprep.subr.bf16.mxu1 %v637_v0  ;;  %464 = vmatprep.mubr.msk.bf16.mxu1 %vm638_vm0, %v637_v0  ;;  %v526_v3 = vld [vmem:[%s166_s11 + $0x8] ss:$12 sps:$4 sm:$0xff]   ;;  %v527_v4 = vld [vmem:[%s166_s11] ss:$12 sps:$4 sm:$0xff]   ;;  %vm253_vm1 = vcmask 1041408   ;;  %vm249_vm2 = vcmask 293888  }
  0x3b   : > { %295 = vmatprep.mubr.bf16.mxu0 %v639_v1  ;;  %523 = vset.pattern.permute.xlu0 %v639_v1  ;;  %v528_v5 = vld [vmem:[%s166_s11 + $0x1c] ss:$12 sps:$4 sm:$0xff]   ;;  %v530_v6 = vld [vmem:[%s166_s11 + $0x20] ss:$12 sps:$4 sm:$0xff]   ;;  %v531_v7 = vld [vmem:[%s166_s11 + $0x18] ss:$12 sps:$4 sm:$0xff]  }
  0x3c   : > { %263 = vmatprep.subr.bf16.mxu0 %v524_v2  ;;  %459 = vmatpush3.bf16.msra.mxu1 %v526_v3  ;;  %v201_v8 = vld [vmem:[%s166_s11 + $0x30] sm:$0x33]  ;;  %v533_v10 = vld [vmem:[%s166_s11 + $0x38] ss:$0 sps:$4 sm:$0x33]   ;;  %v203_v12 = vld [vmem:[%s829_s2] sm:$0xff] }
  0x3d   : > { %264 = vmatpush1.bf16.msra.mxu0 %v527_v4  ;;  %460 = vmatprep.subr.bf16.mxu1 %v637_v0  ;;  %v444_v9 = vcombine.high %v201_v8, %v201_v8  ;;  %v443_v11 = vcombine.low %v201_v8, %v201_v8  ;;  %v261_v13 = vsel %vm253_vm1, %v533_v10, 0  ;;  %v192_v15 = vld [vmem:[%s827_s0] sm:$0xf]  ;;  %s470_s7 = smul.u32 24, %s761_s8  ;;  %p837_p11 = scmp.ne.s32.totalorder %s833_s23, 0 }
  0x3e   : > { %265 = vmatprep.subr.bf16.mxu0 %v528_v5  ;;  %206 = vperm.xlu0 %523, %v203_v12   ;;  %s453_s17 = smul.u32 384, %s682_s16  ;;  %s348_s16 = scalar_lea.sflag [#allocation4], %s761_s8 }
  0x3f   : > { %v255_v14 = vsel %vm253_vm1, %v443_v11, 0  ;;  %s188_s19 = scalar_lea.vmem [#allocation5], %s470_s7  ;;  %s640_s29 = smov [#allocation5]  }
  0x40   : > { %461 = vmatpush3.bf16.msra.mxu1 %v530_v6  ;;  %s362_s20 = sshll.u32 %s188_s19, 4  ;;  %s783_s27 = scalar_lea.hbm %s830_s3, %s453_s17  ;;  %s785_s20 = int_to_ptr.vmem [resolvable:$true] %s362_s20 }
  0x41   : > { %266 = vmatpush1.bf16.msra.mxu0 %v531_v7  ;;  %462 = vmatprep.subr.bf16.mxu1 %v637_v0  ;;  %s565_s28 = scalar_lea.vmem %s785_s20, 384  ;;  %s569_s5 = sshll.u32 %s640_s29, 4  ;;  %s570_s5 = int_to_ptr.vmem [resolvable:$false] %s569_s5 }
  0x42   : > { %446 = vmatprep.subr.msk.bf16.mxu0 %vm253_vm1, %v444_v9  ;;  %p566_p6 = scmp.ne.s32.totalorder %s785_s20, %s565_s28  ;;  %s571_s9 = scalar_lea.vmem %s570_s5, 768 }
  0x43   : > { %p572_p4 = scmp.lt.s32.totalorder %s785_s20, %s570_s5  ;;  %p573_p10 = scmp.lt.s32.totalorder %s571_s9, %s565_s28 }
  0x44   : > { %463 = vmatpush3.bf16.msra.mxu1 %v261_v13  ;;  %p567_p12 = pnand %p566_p6, %p837_p11 }
  0x45   : > { %268 = vmatpush1.bf16.msra.mxu0 %v255_v14  ;;  %p574_p1 = por %p573_p10, %p572_p4 }
  0x46   : > { %p568_p13 = pneg %p567_p12 }
  0x47   : > { %465 = vmatmul.mubr.msk.bf16.vlgmr.msra.gmra.mrb[0].mxu1 %vm249_vm2, %v192_v15 }
  0x48   : > { %447 = vmatmul.mubr.msk.bf16.vlgmr.msra.gmra.mrb[0].mxu0 %vm249_vm2, %v192_v15  ;;  %p575_p3 = pnand %p574_p1, %p568_p13 }
  0xbd   : > { %v207_v16 = vpop.permute.xlu0 %206 }
 0x11a   : > { %v338_v17 = vpop.f32.mrb[0].mxu1 }
 0x11b   : > { %v339_v18 = vadd.f32 %v338_v17, %v207_v16  ;;  %v297_v19 = vpop.f32.mrb[0].mxu0  ;;  %v466_v20 = vpop.f32.mrb[1].mxu1 }
 0x11c   : > { %v298_v21 = vadd.f32 %v297_v19, %v207_v16  ;;  %v299_v22 = vpop.f32.mrb[1].mxu0  ;;  %v341_v23 = vpop.f32.mrb[2].mxu1 }
 0x11d   : > { %346 = vst [vmem:[%s188_s19 + $0x10] sm:$0xff] %v339_v18  ;;  %v300_v24 = vadd.f32 %v299_v22, %v207_v16  ;;  %v301_v25 = vpop.f32.mrb[2].mxu0  ;;  %v467_v26 = vpop.f32.mrb[3].mxu1 }
 0x11e   : > { %344 = vst [vmem:[%s188_s19] sm:$0xff] %v298_v21  ;;  %v302_v27 = vpop.f32.mrb[3].mxu0 }
 0x11f   : > { %345 = vst [vmem:[%s188_s19 + $0x8] sm:$0xff] %v300_v24 }
 0x120   : > { %578 = shalt.err (!%p575_p3)
}
 0x121   : > { %s579_s8 = scalar_lea.hbm %s783_s27, 384  ;;  %s583_s22 = scalar_lea.hbm %s830_s3, 768 }
 0x122   : > { %p580_p5 = scmp.ne.s32.totalorder %s783_s27, %s579_s8  ;;  %p584_p9 = scmp.lt.u32.totalorder %s783_s27, %s830_s3 }
 0x123   : > { %p585_p0 = scmp.lt.u32.totalorder %s583_s22, %s579_s8  ;;  %p587_p6 = scmp.lt.u32.totalorder %s579_s8, %s783_s27 }
 0x124   : > { %p581_p7 = pnand %p580_p5, %p837_p11 }
 0x125   : > { %p586_p2 = por %p585_p0, %p584_p9 }
 0x126   : > { %p582_p8 = pneg %p581_p7 }
 0x127   : > { %p588_p12 = por %p587_p6, %p586_p2 }
 0x129   : > { %p589_p13 = pnand %p588_p12, %p582_p8 }
 0x12b   : > { %592 = shalt.err (!%p589_p13)
}
 0x12c   : > { %473 = dma.vmem_to_hbm [thread:$0]  (%p837_p11), %s785_s20, 384, %s783_s27, %s348_s16  }
 0x12d PF: > { %s374_s6 = sand.u32 1, %s619_s12   ;;  %p838_p4 = scmp.ne.s32.totalorder %s834_s24, 0 }
 0x12e   : > { %p839_p10 = scmp.ge.s32.totalorder %s631_s15, 2  ;;  %s375_s7 = scalar_lea.sflag [#allocation4], %s374_s6 }
 0x130   : > { %p480_p1 = pnand %p839_p10, %p838_p4 }
 0x132   : > { %614 = dma.done.wait (!%p480_p1), %s375_s7, 384  }
 0x133   : > { %616 = vsyncadd (!%p480_p1), %s375_s7, 4294966912  ;;  %p16_p3 = scmp.ge.s32.totalorder %s686_s18, 4   ;;  %s840_s12 = smov %s623_s13 }
 0x134   : > { %s841_s13 = smov %s627_s14  ;;  %s842_s14 = smov %s698_s21 }
 0x135   : > { %s843_s15 = smov %s686_s18  ;;  %18 = sbr.rel (!%p16_p3) target bundleno = 5 (0x5), region = 77 }
 0x13c   :  { %380 = vsyncpa [#allocation3], 1 }
 0x13d   :  { %382 = vsyncpa [#allocation3 + $0x1], 1 }
 0x13e   :  { %383 = vsyncpa [#allocation4], 1 }
 0x13f   :  { %385 = vsyncpa [#allocation4 + $0x1], 1 }

</bundles_post_ra>
